<compile_context>
chip_gen: v7x
topology: tpu7x:2x2x1
jax: 0.10.0
libtpu: 0.0.40
codegen_flags: <defaults>
</compile_context>

<pallas_src>
import functools

import jax
import jax.numpy as jnp
from jax import lax
from jax.experimental import pallas as pl
from jax.experimental.pallas import tpu as pltpu


# ----------------------------------------------------------------------------
# Fused kernel (per batch tile of BM rows):
#   r/s/b  = onehot @ per-estimator tables                 (BM, .)
#   y      = ((x * r_c) @ Wc^T) * s_c + b_c                (BM, O)
#   out    = ((y * r_f) @ Wf^T) * s_f + b_f                (BM, O)
# Everything intermediate stays in vregs/VMEM.
# ----------------------------------------------------------------------------
def _fused_be_kernel(onehot_ref, x_ref, conv_rf_ref, conv_w_ref, conv_s_ref,
                     conv_b_ref, fc_w_ref, fc_r_ref, fc_s_ref, fc_b_ref,
                     o_ref):
    onehot = onehot_ref[...]                                       # (BM, E)

    def sel(tbl_ref):
        # Per-sample estimator selection as a tiny one-hot matmul; avoids any
        # batch-expanded factor tensors in HBM.
        return jnp.dot(onehot, tbl_ref[...],
                       preferred_element_type=jnp.float32)

    r_c = sel(conv_rf_ref)   # (BM, C*HW)
    s_c = sel(conv_s_ref)    # (BM, O)
    b_c = sel(conv_b_ref)    # (BM, O)
    r_f = sel(fc_r_ref)      # (BM, O)
    s_f = sel(fc_s_ref)      # (BM, O)
    b_f = sel(fc_b_ref)      # (BM, O)

    # "Conv" = full contraction against the (O, C*HW) weight; contract dim 1
    # of both operands so no transpose is ever materialized.
    dn = (((1,), (1,)), ((), ()))
    xs = x_ref[...] * r_c
    y = lax.dot_general(xs, conv_w_ref[...], dn,
                        preferred_element_type=jnp.float32)
    y = y * s_c + b_c

    z = lax.dot_general(y * r_f, fc_w_ref[...], dn,
                        preferred_element_type=jnp.float32)
    o_ref[...] = z * s_f + b_f


def _estimator_onehot(batch_size, num_estimators):
    """torch: repeat_interleave(B // E) then wraparound remainder -> one-hot."""
    epe = batch_size // num_estimators
    extra = batch_size % num_estimators
    eid = jnp.repeat(jnp.arange(num_estimators, dtype=jnp.int32), epe)
    if extra:
        # TODO(synk): matches torch_uncertainty's remainder handling (wrap the
        # already-expanded rows); verify against the exact torch version used.
        eid = jnp.concatenate([eid, eid[:extra]])
    return jax.nn.one_hot(eid, num_estimators, dtype=jnp.float32)  # (B, E)


@functools.partial(jax.jit, static_argnames=("num_estimators",))
def dummy_be_model_forward(x, params, *, num_estimators):
    """x: NCHW (B, C, 3, 3) float32 -> (B, out_features) float32."""
    B, C, H, W = x.shape
    O = params["conv_w"].shape[0]
    K = C * H * W
    E = num_estimators

    # Metadata reshapes only (NCHW channel-major flatten); no per-sample
    # repeat, no transpose.
    x_flat = x.reshape(B, K)
    conv_w_flat = params["conv_w"].reshape(O, K)
    # Per-estimator conv input scale, expanded once over the 3x3 window:
    # still O(E)-sized, not O(B)-sized.
    conv_rf = jnp.repeat(params["conv_r"], H * W, axis=1)          # (E, K)

    onehot = _estimator_onehot(B, E)                               # (B, E)

    # Batch-tiled grid ("parallel" -> megacore sharding on multi-TC chips).
    bm = B if B <= 128 else 128
    grid = (pl.cdiv(B, bm),)

    full2 = lambda shape: pl.BlockSpec(shape, lambda i: (0, 0))
    batch2 = lambda width: pl.BlockSpec((bm, width), lambda i: (i, 0))

    return pl.pallas_call(
        _fused_be_kernel,
        out_shape=jax.ShapeDtypeStruct((B, O), jnp.float32),
        grid=grid,
        in_specs=[
            batch2(E),        # onehot     (B, E)
            batch2(K),        # x_flat     (B, K)
            full2((E, K)),    # conv_rf    (E, K)
            full2((O, K)),    # conv_w     (O, K)
            full2((E, O)),    # conv_s
            full2((E, O)),    # conv_b
            full2((O, O)),    # fc_w
            full2((E, O)),    # fc_r
            full2((E, O)),    # fc_s
            full2((E, O)),    # fc_b
        ],
        out_specs=batch2(O),
        compiler_params=pltpu.CompilerParams(
            dimension_semantics=("parallel",)),
    )(onehot, x_flat, conv_rf, conv_w_flat, params["conv_s"],
      params["conv_b"], params["fc_w"], params["fc_r"], params["fc_s"],
      params["fc_b"])


# ----------------------------------------------------------------------------
# Parameter init (mirrors BatchConv2d / BatchLinear parameter shapes).
# ----------------------------------------------------------------------------
def init_params(key, in_features, out_features, num_estimators):
    ks = jax.random.split(key, 8)
    f32 = jnp.float32
    return {
        "conv_w": 0.1 * jax.random.normal(
            ks[0], (out_features, in_features, 3, 3), f32),
        "conv_r": 1.0 + 0.1 * jax.random.normal(
            ks[1], (num_estimators, in_features), f32),
        "conv_s": 1.0 + 0.1 * jax.random.normal(
            ks[2], (num_estimators, out_features), f32),
        "conv_b": 0.1 * jax.random.normal(
            ks[3], (num_estimators, out_features), f32),
        "fc_w": 0.1 * jax.random.normal(
            ks[4], (out_features, out_features), f32),
        "fc_r": 1.0 + 0.1 * jax.random.normal(
            ks[5], (num_estimators, out_features), f32),
        "fc_s": 1.0 + 0.1 * jax.random.normal(
            ks[6], (num_estimators, out_features), f32),
        "fc_b": 0.1 * jax.random.normal(
            ks[7], (num_estimators, out_features), f32),
    }


# ----------------------------------------------------------------------------
# Pure-JAX reference (same math, no Pallas) for a correctness check.
# ----------------------------------------------------------------------------
def _expand_to_batch(p, batch_size, num_estimators):
    epe = batch_size // num_estimators
    extra = batch_size % num_estimators
    rep = jnp.repeat(p, epe, axis=0)
    if extra:
        rep = jnp.concatenate([rep, rep[:extra]], axis=0)
    return rep


def _reference(x, params, num_estimators):
    B = x.shape[0]
    exp = lambda p: _expand_to_batch(p, B, num_estimators)
    xs = x * exp(params["conv_r"])[:, :, None, None]
    conv = jnp.einsum("bchw,ochw->bo", xs, params["conv_w"])
    y = conv * exp(params["conv_s"]) + exp(params["conv_b"])
    z = (y * exp(params["fc_r"])) @ params["fc_w"].T
    return z * exp(params["fc_s"]) + exp(params["fc_b"])


if __name__ == "__main__":
    in_features, out_features, num_estimators = 4, 8, 2
    B, H, W = 4, 3, 3   # 3x3 spatial is forced by conv(3, pad=0) -> fc(out, out)

    key = jax.random.PRNGKey(0)
    kx, kp = jax.random.split(key)
    x = jax.random.normal(kx, (B, in_features, H, W), jnp.float32)
    params = init_params(kp, in_features, out_features, num_estimators)

    out = dummy_be_model_forward(x, params, num_estimators=num_estimators)
    out = jax.block_until_ready(out)

    ref = _reference(x, params, num_estimators)
    assert out.shape == (B, out_features), out.shape
    assert jnp.allclose(out, ref, atol=1e-5, rtol=1e-5), \
        float(jnp.max(jnp.abs(out - ref)))

    print("KERNEL_OK")
</pallas_src>

<mosaic_0001>
module attributes {stable_mosaic.version = 11 : i64} {
  func.func @_fused_be_kernel(%arg0: i32, %arg1: memref<4x2xf32, #tpu.memory_space<vmem>>, %arg2: memref<4x36xf32, #tpu.memory_space<vmem>>, %arg3: memref<2x36xf32, #tpu.memory_space<vmem>>, %arg4: memref<8x36xf32, #tpu.memory_space<vmem>>, %arg5: memref<2x8xf32, #tpu.memory_space<vmem>>, %arg6: memref<2x8xf32, #tpu.memory_space<vmem>>, %arg7: memref<8x8xf32, #tpu.memory_space<vmem>>, %arg8: memref<2x8xf32, #tpu.memory_space<vmem>>, %arg9: memref<2x8xf32, #tpu.memory_space<vmem>>, %arg10: memref<2x8xf32, #tpu.memory_space<vmem>>, %arg11: memref<4x8xf32, #tpu.memory_space<vmem>>) attributes {dimension_semantics = [#tpu.dimension_semantics<parallel>], iteration_bounds = array<i64: 1>, scalar_prefetch = 0 : i64, scratch_operands = 0 : i64, tpu.core_type = #tpu.core_type<tc>, window_params = [{transform_indices = @transform_0, window_bounds = array<i64: 4, 2>}, {transform_indices = @transform_1, window_bounds = array<i64: 4, 36>}, {pipeline_mode = #tpu.pipeline_mode<synchronous>, transform_indices = @transform_2, window_bounds = array<i64: 2, 36>}, {pipeline_mode = #tpu.pipeline_mode<synchronous>, transform_indices = @transform_3, window_bounds = array<i64: 8, 36>}, {pipeline_mode = #tpu.pipeline_mode<synchronous>, transform_indices = @transform_4, window_bounds = array<i64: 2, 8>}, {pipeline_mode = #tpu.pipeline_mode<synchronous>, transform_indices = @transform_5, window_bounds = array<i64: 2, 8>}, {pipeline_mode = #tpu.pipeline_mode<synchronous>, transform_indices = @transform_6, window_bounds = array<i64: 8, 8>}, {pipeline_mode = #tpu.pipeline_mode<synchronous>, transform_indices = @transform_7, window_bounds = array<i64: 2, 8>}, {pipeline_mode = #tpu.pipeline_mode<synchronous>, transform_indices = @transform_8, window_bounds = array<i64: 2, 8>}, {pipeline_mode = #tpu.pipeline_mode<synchronous>, transform_indices = @transform_9, window_bounds = array<i64: 2, 8>}, {transform_indices = @transform_10, window_bounds = array<i64: 4, 8>}]} {
    %c0 = arith.constant 0 : index
    %c0_0 = arith.constant 0 : index
    %0 = vector.load %arg1[%c0, %c0_0] : memref<4x2xf32, #tpu.memory_space<vmem>>, vector<4x2xf32>
    %c0_1 = arith.constant 0 : index
    %c0_2 = arith.constant 0 : index
    %1 = vector.load %arg3[%c0_1, %c0_2] : memref<2x36xf32, #tpu.memory_space<vmem>>, vector<2x36xf32>
    %cst = arith.constant dense<0.000000e+00> : vector<4x36xf32>
    %2 = tpu.matmul %0, %1, %cst {dimension_numbers = #tpu.dot_dimension_numbers<[1], [0], [0], [1], [0, 0, 1, 1], [], []>} : vector<4x2xf32>, vector<2x36xf32>, vector<4x36xf32> -> vector<4x36xf32>
    %c0_3 = arith.constant 0 : index
    %c0_4 = arith.constant 0 : index
    %3 = vector.load %arg5[%c0_3, %c0_4] : memref<2x8xf32, #tpu.memory_space<vmem>>, vector<2x8xf32>
    %cst_5 = arith.constant dense<0.000000e+00> : vector<4x8xf32>
    %4 = tpu.matmul %0, %3, %cst_5 {dimension_numbers = #tpu.dot_dimension_numbers<[1], [0], [0], [1], [0, 0, 1, 1], [], []>} : vector<4x2xf32>, vector<2x8xf32>, vector<4x8xf32> -> vector<4x8xf32>
    %c0_6 = arith.constant 0 : index
    %c0_7 = arith.constant 0 : index
    %5 = vector.load %arg6[%c0_6, %c0_7] : memref<2x8xf32, #tpu.memory_space<vmem>>, vector<2x8xf32>
    %cst_8 = arith.constant dense<0.000000e+00> : vector<4x8xf32>
    %6 = tpu.matmul %0, %5, %cst_8 {dimension_numbers = #tpu.dot_dimension_numbers<[1], [0], [0], [1], [0, 0, 1, 1], [], []>} : vector<4x2xf32>, vector<2x8xf32>, vector<4x8xf32> -> vector<4x8xf32>
    %c0_9 = arith.constant 0 : index
    %c0_10 = arith.constant 0 : index
    %7 = vector.load %arg8[%c0_9, %c0_10] : memref<2x8xf32, #tpu.memory_space<vmem>>, vector<2x8xf32>
    %cst_11 = arith.constant dense<0.000000e+00> : vector<4x8xf32>
    %8 = tpu.matmul %0, %7, %cst_11 {dimension_numbers = #tpu.dot_dimension_numbers<[1], [0], [0], [1], [0, 0, 1, 1], [], []>} : vector<4x2xf32>, vector<2x8xf32>, vector<4x8xf32> -> vector<4x8xf32>
    %c0_12 = arith.constant 0 : index
    %c0_13 = arith.constant 0 : index
    %9 = vector.load %arg9[%c0_12, %c0_13] : memref<2x8xf32, #tpu.memory_space<vmem>>, vector<2x8xf32>
    %cst_14 = arith.constant dense<0.000000e+00> : vector<4x8xf32>
    %10 = tpu.matmul %0, %9, %cst_14 {dimension_numbers = #tpu.dot_dimension_numbers<[1], [0], [0], [1], [0, 0, 1, 1], [], []>} : vector<4x2xf32>, vector<2x8xf32>, vector<4x8xf32> -> vector<4x8xf32>
    %c0_15 = arith.constant 0 : index
    %c0_16 = arith.constant 0 : index
    %11 = vector.load %arg10[%c0_15, %c0_16] : memref<2x8xf32, #tpu.memory_space<vmem>>, vector<2x8xf32>
    %cst_17 = arith.constant dense<0.000000e+00> : vector<4x8xf32>
    %12 = tpu.matmul %0, %11, %cst_17 {dimension_numbers = #tpu.dot_dimension_numbers<[1], [0], [0], [1], [0, 0, 1, 1], [], []>} : vector<4x2xf32>, vector<2x8xf32>, vector<4x8xf32> -> vector<4x8xf32>
    %c0_18 = arith.constant 0 : index
    %c0_19 = arith.constant 0 : index
    %13 = vector.load %arg2[%c0_18, %c0_19] : memref<4x36xf32, #tpu.memory_space<vmem>>, vector<4x36xf32>
    %14 = arith.mulf %13, %2 : vector<4x36xf32>
    %c0_20 = arith.constant 0 : index
    %c0_21 = arith.constant 0 : index
    %15 = vector.load %arg4[%c0_20, %c0_21] : memref<8x36xf32, #tpu.memory_space<vmem>>, vector<8x36xf32>
    %cst_22 = arith.constant dense<0.000000e+00> : vector<4x8xf32>
    %16 = tpu.matmul %14, %15, %cst_22 {dimension_numbers = #tpu.dot_dimension_numbers<[1], [1], [0], [0], [0, 0, 1, 0], [], []>} : vector<4x36xf32>, vector<8x36xf32>, vector<4x8xf32> -> vector<4x8xf32>
    %17 = arith.mulf %16, %4 : vector<4x8xf32>
    %18 = arith.addf %17, %6 : vector<4x8xf32>
    %19 = arith.mulf %18, %8 : vector<4x8xf32>
    %c0_23 = arith.constant 0 : index
    %c0_24 = arith.constant 0 : index
    %20 = vector.load %arg7[%c0_23, %c0_24] : memref<8x8xf32, #tpu.memory_space<vmem>>, vector<8x8xf32>
    %cst_25 = arith.constant dense<0.000000e+00> : vector<4x8xf32>
    %21 = tpu.matmul %19, %20, %cst_25 {dimension_numbers = #tpu.dot_dimension_numbers<[1], [1], [0], [0], [0, 0, 1, 0], [], []>} : vector<4x8xf32>, vector<8x8xf32>, vector<4x8xf32> -> vector<4x8xf32>
    %22 = arith.mulf %21, %10 : vector<4x8xf32>
    %23 = arith.addf %22, %12 : vector<4x8xf32>
    %c0_26 = arith.constant 0 : index
    %c0_27 = arith.constant 0 : index
    %24 = vector.load %arg11[%c0_26, %c0_27] : memref<4x8xf32, #tpu.memory_space<vmem>>, vector<4x8xf32>
    tpu.vector_store %arg11[%c0_26, %c0_27], %23 {strides = array<i32>} : memref<4x8xf32, #tpu.memory_space<vmem>>, vector<4x8xf32>,
    return
  }
  func.func @transform_0(%arg0: i32) -> (i32, i32) {
    %c0_i32 = arith.constant 0 : i32
    %c0_i32_0 = arith.constant 0 : i32
    return %arg0, %c0_i32 : i32, i32
  }
  func.func @transform_1(%arg0: i32) -> (i32, i32) {
    %c0_i32 = arith.constant 0 : i32
    %c0_i32_0 = arith.constant 0 : i32
    return %arg0, %c0_i32 : i32, i32
  }
  func.func @transform_2(%arg0: i32) -> (i32, i32) {
    %c0_i32 = arith.constant 0 : i32
    %c0_i32_0 = arith.constant 0 : i32
    %c0_i32_1 = arith.constant 0 : i32
    return %c0_i32, %c0_i32_0 : i32, i32
  }
  func.func @transform_3(%arg0: i32) -> (i32, i32) {
    %c0_i32 = arith.constant 0 : i32
    %c0_i32_0 = arith.constant 0 : i32
    %c0_i32_1 = arith.constant 0 : i32
    return %c0_i32, %c0_i32_0 : i32, i32
  }
  func.func @transform_4(%arg0: i32) -> (i32, i32) {
    %c0_i32 = arith.constant 0 : i32
    %c0_i32_0 = arith.constant 0 : i32
    %c0_i32_1 = arith.constant 0 : i32
    return %c0_i32, %c0_i32_0 : i32, i32
  }
  func.func @transform_5(%arg0: i32) -> (i32, i32) {
    %c0_i32 = arith.constant 0 : i32
    %c0_i32_0 = arith.constant 0 : i32
    %c0_i32_1 = arith.constant 0 : i32
    return %c0_i32, %c0_i32_0 : i32, i32
  }
  func.func @transform_6(%arg0: i32) -> (i32, i32) {
    %c0_i32 = arith.constant 0 : i32
    %c0_i32_0 = arith.constant 0 : i32
    %c0_i32_1 = arith.constant 0 : i32
    return %c0_i32, %c0_i32_0 : i32, i32
  }
  func.func @transform_7(%arg0: i32) -> (i32, i32) {
    %c0_i32 = arith.constant 0 : i32
    %c0_i32_0 = arith.constant 0 : i32
    %c0_i32_1 = arith.constant 0 : i32
    return %c0_i32, %c0_i32_0 : i32, i32
  }
  func.func @transform_8(%arg0: i32) -> (i32, i32) {
    %c0_i32 = arith.constant 0 : i32
    %c0_i32_0 = arith.constant 0 : i32
    %c0_i32_1 = arith.constant 0 : i32
    return %c0_i32, %c0_i32_0 : i32, i32
  }
  func.func @transform_9(%arg0: i32) -> (i32, i32) {
    %c0_i32 = arith.constant 0 : i32
    %c0_i32_0 = arith.constant 0 : i32
    %c0_i32_1 = arith.constant 0 : i32
    return %c0_i32, %c0_i32_0 : i32, i32
  }
  func.func @transform_10(%arg0: i32) -> (i32, i32) {
    %c0_i32 = arith.constant 0 : i32
    %c0_i32_0 = arith.constant 0 : i32
    return %arg0, %c0_i32 : i32, i32
  }
}

</mosaic_0001>

<bundles_post_ra>
// kernel: eq.1
= control target key start
LH: loop header
LB: loop body
LE: loop exit
PB: predicated region body
PF: predicated region fallthrough
CT: control target
= control target key end

     0   :  { %vm7_vm0 = vcmask 15360   ;;  %vm13_vm1 = vcmask 31760   ;;  %s39_s0 = inlined_call_operand.vmem [shape: s32[2,2], index: 0, kind: input, shape index: {}]   ;;  %s40_s1 = inlined_call_operand.vmem [shape: s32[4], index: 1, kind: output, shape index: {}]  }
   0x1   :  { %v4_v0 = vld [vmem:[%s39_s0] sm:$0x3]  ;;  %s22_s0 = smov 2  }
   0x2   :  { %5 = vst [vmem:[#allocation1] sm:$0x3] %v4_v0 }
   0x9   :  { %v10_v1 = vld [vmem:[#allocation1 + $0x1] sm:$0x1]   ;;  %v6_v2 = vld [vmem:[#allocation1] sm:$0x1]  }
   0xa   :  { %11 = vrot.lane.b32.xlu0 %v10_v1, %s22_s0  ;;  %8 = vst.msk [vmem:[#allocation0] sm:$0x1] %vm7_vm0, %v6_v2  }
  0x7c   :  { %v12_v3 = vpop.permute.xlu0 %11  }
  0x7d   :  { %14 = vst.msk [vmem:[#allocation0] sm:$0x1] %vm13_vm1, %v12_v3  }
  0x84   :  { %v18_v4 = vld [vmem:[#allocation0] sm:$0x1] }
  0x85   :  { %20 = vst [vmem:[%s40_s1] sm:$0x1] %v18_v4 }

// kernel: dummy_be_model_forward.1
= control target key start
LH: loop header
LB: loop body
LE: loop exit
PB: predicated region body
PF: predicated region fallthrough
CT: control target
= control target key end

     0   :  { %vm42_vm0 = vcmask 1041408   ;;  %vm38_vm1 = vcmask 15360   ;;  %v764_v1 = vmov 0.0   ;;  %vm765_vm2 = vmmov 0   ;;  %s886_s0 = inlined_call_operand.vmem [shape: f32[4,2], index: 0, kind: input, shape index: {}]   ;;  %s887_s1 = inlined_call_operand.vmem [shape: f32[4,36], index: 1, kind: input, shape index: {}]   ;;  %s888_s2 = inlined_call_operand.vmem [shape: f32[2,36], index: 2, kind: input, shape index: {}]   ;;  %s889_s3 = inlined_call_operand.vmem [shape: f32[8,36], index: 3, kind: input, shape index: {}]   ;;  %s890_s4 = inlined_call_operand.vmem [shape: f32[2,8], index: 4, kind: input, shape index: {}]   ;;  %s891_s5 = inlined_call_operand.vmem [shape: f32[2,8], index: 5, kind: input, shape index: {}]   ;;  %s892_s6 = inlined_call_operand.vmem [shape: f32[8,8], index: 6, kind: input, shape index: {}]   ;;  %s893_s7 = inlined_call_operand.vmem [shape: f32[2,8], index: 7, kind: input, shape index: {}]   ;;  %s894_s8 = inlined_call_operand.vmem [shape: f32[2,8], index: 8, kind: input, shape index: {}]   ;;  %s895_s9 = inlined_call_operand.vmem [shape: f32[2,8], index: 9, kind: input, shape index: {}]   ;;  %s896_s10 = inlined_call_operand.hbm [shape: f32[4,8], index: 10, kind: output, shape index: {}]  }
   0x1   :  { %v37_v0 = vld [vmem:[%s888_s2] sm:$0x3]  ;;  %697 = vmatprep.subr.mxu0 %v764_v1  ;;  %699 = vmatprep.mubr.msk.f32.mxu0 %vm765_vm2, %v764_v1 }
   0x2   :  { %v36_v2 = vld [vmem:[%s886_s0] sm:$0xf]  ;;  %698 = vmatpush3.msk.msra.mxu0 %vm42_vm0, %v37_v0  ;;  %702 = vmatprep.subr.mxu1 %v764_v1 }
   0x3   :  { %v190_v3 = vld [vmem:[%s891_s5] sm:$0x3] }
   0x4   :  { %15 = vsyncpa [#allocation3], 0  ;;  %700 = vmatmul.mubr.msk.f32.vlgmr.msra.gmra.mrb[0].mxu0 %vm38_vm1, %v36_v2  ;;  %707 = vmatprep.subr.mxu0 %v764_v1  ;;  %v338_v4 = vld [vmem:[%s894_s8] sm:$0x3]  ;;  %vm489_vm3 = vcmask 293888   ;;  %vm570_vm4 = vcmask 64512  }
   0x5   :  { %708 = vmatpush3.msk.msra.mxu0 %vm42_vm0, %v190_v3  ;;  %709 = vmatprep.mubr.msk.f32.mxu0 %vm765_vm2, %v764_v1  ;;  %v488_v5 = vld [vmem:[%s889_s3] sm:$0xff]  ;;  %vm649_vm5 = vcmask 60416  }
   0x6   :  { %717 = vmatprep.subr.mxu0 %v764_v1  ;;  %704 = vmatprep.mubr.msk.f32.mxu1 %vm765_vm2, %v764_v1  ;;  %v116_v6 = vld [vmem:[%s890_s4] sm:$0x3] }
   0x7   :  { %703 = vmatpush3.msk.msra.mxu1 %vm42_vm0, %v116_v6  ;;  %v264_v7 = vld [vmem:[%s893_s7] sm:$0x3] }
   0x8   :  { %710 = vmatmul.mubr.msk.f32.vlgmr.msra.gmra.mrb[2].mxu0 %vm38_vm1, %v36_v2  ;;  %705 = vmatmul.mubr.msk.f32.vlgmr.msra.gmra.mrb[0].mxu1 %vm38_vm1, %v36_v2  ;;  %v412_v8 = vld [vmem:[%s895_s9] sm:$0x3] }
   0x9   :  { %718 = vmatpush3.msk.msra.mxu0 %vm42_vm0, %v338_v4  ;;  %719 = vmatprep.mubr.msk.f32.mxu0 %vm765_vm2, %v764_v1  ;;  %v486_v9 = vld [vmem:[%s887_s1] sm:$0xf]  ;;  %s766_s1 = smov [#allocation2]  }
   0xa   :  { %727 = vmatprep.subr.mxu0 %v764_v1  ;;  %712 = vmatprep.subr.mxu1 %v764_v1  ;;  %v569_v20 = vld [vmem:[%s892_s6] sm:$0xff]  ;;  %s657_s25 = sshll.u32 %s766_s1, 4  ;;  %s658_s25 = int_to_ptr.vmem [resolvable:$true] %s657_s25 }
   0xb   :  { %713 = vmatpush3.msk.msra.mxu1 %vm42_vm0, %v264_v7  ;;  %714 = vmatprep.mubr.msk.f32.mxu1 %vm765_vm2, %v764_v1  ;;  %s740_s6 = scalar_lea.vmem %s658_s25, 64  ;;  %p745_p1 = scmp.lt.s32.totalorder %s658_s25, %s658_s25 }
   0xc   :  { %720 = vmatmul.mubr.msk.f32.vlgmr.msra.gmra.mrb[4].mxu0 %vm38_vm1, %v36_v2  ;;  %722 = vmatprep.subr.mxu1 %v764_v1  ;;  %p741_p0 = scmp.ne.s32.totalorder %s658_s25, %s740_s6  ;;  %p746_p2 = scmp.lt.s32.totalorder %s740_s6, %s740_s6 }
   0xd   :  { %729 = vmatprep.mubr.msk.f32.mxu0 %vm765_vm2, %v764_v1  ;;  %715 = vmatmul.mubr.msk.f32.vlgmr.msra.gmra.mrb[2].mxu1 %vm38_vm1, %v36_v2 }
   0xe   :  { %724 = vmatprep.mubr.msk.f32.mxu1 %vm765_vm2, %v764_v1  ;;  %723 = vmatpush3.msk.msra.mxu1 %vm42_vm0, %v412_v8  ;;  %p747_p3 = por %p746_p2, %p745_p1 }
   0xf   :  { %732 = vmatprep.subr.mxu1 %v764_v1 }
  0x10   :  { %728 = vmatpush3.xpose.msk.msra.mxu0 %vm489_vm3, %v488_v5  ;;  %p748_p4 = pnand %p747_p3, %p741_p0 }
  0x11   :  { %725 = vmatmul.mubr.msk.f32.vlgmr.msra.gmra.mrb[4].mxu1 %vm38_vm1, %v36_v2 }
  0x12   :  { %734 = vmatprep.mubr.msk.f32.mxu1 %vm765_vm2, %v764_v1 }
  0x15   :  { %733 = vmatpush3.xpose.msk.msra.mxu1 %vm570_vm4, %v569_v20 }
  0xd7   :  { %v112_v10 = vpop.f32.mrb[0].mxu0 }
  0xd8   :  { %v487_v11 = vmul.f32 %v486_v9, %v112_v10  ;;  %v701_v12 = vpop.f32.mrb[1].mxu0 }
  0xda   :  { %730 = vmatmul.mubr.msk.f32.vlgmr.msra.gmra.mrb[6].mxu0 %vm489_vm3, %v487_v11 }
  0xdb   :  { %v260_v13 = vpop.f32.mrb[2].mxu0  ;;  %v186_v17 = vpop.f32.mrb[0].mxu1 }
  0xdc   :  { %v711_v14 = vpop.f32.mrb[3].mxu0  ;;  %v706_v18 = vpop.f32.mrb[1].mxu1 }
  0xdf   :  { %v408_v15 = vpop.f32.mrb[4].mxu0 }
  0xe0   :  { %v721_v16 = vpop.f32.mrb[5].mxu0  ;;  %v334_v19 = vpop.f32.mrb[2].mxu1 }
  0xe1   :  { %v716_v21 = vpop.f32.mrb[3].mxu1 }
  0xe4   :  { %v482_v22 = vpop.f32.mrb[4].mxu1 }
  0xe5   :  { %v726_v23 = vpop.f32.mrb[5].mxu1 }
 0x1ad   :  { %v562_v24 = vpop.f32.mrb[6].mxu0 }
 0x1ae   :  { %v566_v25 = vmul.f32 %v562_v24, %v186_v17  ;;  %v731_v26 = vpop.f32.mrb[7].mxu0 }
 0x1b0   :  { %v567_v27 = vadd.f32 %v566_v25, %v260_v13 }
 0x1b2   :  { %v568_v28 = vmul.f32 %v567_v27, %v334_v19 }
 0x1b4   :  { %735 = vmatmul.mubr.msk.f32.vlgmr.msra.gmra.mrb[6].mxu1 %vm570_vm4, %v568_v28 }
 0x287   :  { %v643_v29 = vpop.f32.mrb[6].mxu1 }
 0x288   :  { %v647_v30 = vmul.f32 %v643_v29, %v408_v15  ;;  %v736_v31 = vpop.f32.mrb[7].mxu1 }
 0x28a   :  { %v648_v32 = vadd.f32 %v647_v30, %v482_v22 }
 0x28c   :  { %650 = vst.msk [vmem:[#allocation2] sm:$0xf] %vm649_vm5, %v648_v32 }
 0x28d   :  { %751 = shalt.err (!%p748_p4)
}
 0x28e   :  { %s752_s28 = scalar_lea.hbm %s896_s10, 64 }
 0x28f   :  { %p753_p5 = scmp.ne.s32.totalorder %s896_s10, %s752_s28  ;;  %p756_p6 = scmp.lt.u32.totalorder %s752_s28, %s896_s10 }
 0x291   :  { %p758_p7 = pnand %p756_p6, %p753_p5 }
 0x293   :  { %761 = shalt.err (!%p758_p7)
}
 0x294   :  { %660 = dma.vmem_to_hbm [thread:$0]  %s658_s25, 64, %s896_s10, [#allocation3]  }
 0x295   :  { %762 = dma.done.wait [#allocation3], 64  }
 0x296   :  { %763 = vsyncadd [#allocation3], 4294967232 }
 0x297   :  { %664 = vsyncpa [#allocation3], 1 }

</bundles_post_ra>
